<compile_context>
chip_gen: v5e
topology: v5e:2x2
jax: 0.10.0
libtpu: 0.0.40
codegen_flags: <defaults>
</compile_context>

<pallas_src>
import functools

import jax
import jax.numpy as jnp
from jax.experimental import pallas as pl
from jax.experimental.pallas import tpu as pltpu

LANES = 128               # lane width (last dim of the slab)
MAX_TILE_M = 512          # rows per grid step (512*128*4B = 256 KiB per f32 buffer)
NUM_CORES = 2             # leading "parallel" grid axis (sharded across TCs on v7x)
MIN_PALLAS_BYTES = 1 << 20  # below this, pure jnp is already at roofline


def _transform(x, mode):
    xf = x.astype(jnp.float32)
    if mode == "disc_real":
        return jnp.maximum(1.0 - xf, 0.0)
    if mode == "disc_fake":
        return jnp.maximum(1.0 + xf, 0.0)
    return xf  # "gen"


def _hinge_sum_kernel(x_ref, out_ref, acc_ref, *, mode, num_rows, tile_m,
                      tiles_per_core, needs_mask):
    """Per-core partial sum of the hinge transform over row tiles.

    x_ref:   (tile_m, LANES) VMEM tile of the flattened input (native dtype)
    out_ref: (8, LANES) VMEM block of this core's partial-sum output
    acc_ref: (tile_m, LANES) f32 VMEM vector accumulator (scratch)
    """
    c = pl.program_id(0)   # core slot ("parallel")
    i = pl.program_id(1)   # row-tile step within this core ("arbitrary")

    @pl.when(i == 0)
    def _():
        acc_ref[...] = jnp.zeros_like(acc_ref)

    x = x_ref[...].astype(jnp.float32)
    if mode == "disc_real":
        t = jnp.maximum(1.0 - x, 0.0)      # relu(1 - x)
    elif mode == "disc_fake":
        t = jnp.maximum(1.0 + x, 0.0)      # relu(1 + x)
    else:                                  # "gen"
        t = x

    if needs_mask:
        # Logical (unclamped) tile index -> global row index. Rows >= num_rows
        # (ragged last tile / dummy tiles of the last core) contribute exactly 0.
        # Mask the *transformed* value so garbage input can't leak through relu.
        tile_idx = c * tiles_per_core + i
        row = tile_idx * tile_m + jax.lax.broadcasted_iota(
            jnp.int32, (tile_m, LANES), 0)
        t = jnp.where(row < num_rows, t, 0.0)

    acc_ref[...] += t      # pure VALU accumulate; no per-step cross-lane reduce

    @pl.when(i == tiles_per_core - 1)
    def _():
        # Single vreg-wise fold per core; final scalar reduce happens in XLA.
        out_ref[...] = acc_ref[...].reshape(tile_m // 8, 8, LANES).sum(axis=0)


def hinge_gan_loss(x, is_real: bool, is_disc: bool = False, loss_weight: float = 1.0,
                   *, min_pallas_bytes: int = MIN_PALLAS_BYTES):
    """JAX/Pallas equivalent of HingeGANLoss.forward (flags are static Python bools)."""
    n = x.size
    if is_disc:
        mode = "disc_real" if is_real else "disc_fake"
        scale = 1.0 / n
    else:
        assert is_real, "For G loss `is_real` should be True"
        mode = "gen"
        scale = -float(loss_weight) / n

    flat = x.reshape(-1)          # row-major flatten: no copy
    rem = n % LANES
    main_n = n - rem
    num_rows = main_n // LANES

    # Tiny inputs: bypass the pallas_call launch/pipeline overhead.
    if num_rows < 8 or n * x.dtype.itemsize < min_pallas_bytes:
        return jnp.sum(_transform(flat, mode)) * jnp.float32(scale)

    x2 = flat[:main_n].reshape(num_rows, LANES)   # free view when rem == 0

    tile_m = min(MAX_TILE_M, (num_rows // 8) * 8)
    num_tiles = pl.cdiv(num_rows, tile_m)
    tiles_per_core = pl.cdiv(num_tiles, NUM_CORES)
    needs_mask = (num_rows % tile_m != 0) or (tiles_per_core * NUM_CORES != num_tiles)

    kernel = functools.partial(
        _hinge_sum_kernel, mode=mode, num_rows=num_rows, tile_m=tile_m,
        tiles_per_core=tiles_per_core, needs_mask=needs_mask)

    cost = pl.CostEstimate(
        flops=3 * main_n, transcendentals=0,
        bytes_accessed=main_n * x.dtype.itemsize + NUM_CORES * 8 * LANES * 4)

    partials = pl.pallas_call(
        kernel,
        out_shape=jax.ShapeDtypeStruct((NUM_CORES * 8, LANES), jnp.float32),
        grid=(NUM_CORES, tiles_per_core),
        in_specs=[pl.BlockSpec(
            (tile_m, LANES),
            lambda c, i: (jnp.minimum(c * tiles_per_core + i, num_tiles - 1), 0))],
        out_specs=pl.BlockSpec((8, LANES), lambda c, i: (c, 0)),
        scratch_shapes=[pltpu.VMEM((tile_m, LANES), jnp.float32)],
        compiler_params=pltpu.CompilerParams(
            dimension_semantics=("parallel", "arbitrary")),
        cost_estimate=cost,
    )(x2)

    total = jnp.sum(partials)
    if rem:
        # <=127 leftover elements: handled in plain jnp and folded into the sum.
        total = total + jnp.sum(_transform(flat[main_n:], mode))
    return total * jnp.float32(scale)


if __name__ == "__main__":
    key = jax.random.PRNGKey(0)
    k0, k1, k2 = jax.random.split(key, 3)
    loss_weight = 0.5  # deterministic "parameter" from __init__(loss_weight)

    def ref_loss(x, is_real, is_disc):
        xf = x.astype(jnp.float32)
        if is_disc:
            return jnp.mean(jnp.maximum((1.0 - xf) if is_real else (1.0 + xf), 0.0))
        return loss_weight * (-jnp.mean(xf))

    # Small NCHW discriminator output (the module's typical input shape).
    x_small = jax.random.normal(k0, (2, 4, 16, 16), dtype=jnp.float32)
    # Larger feature map: several 512-row tiles per core.
    x_mid = jax.random.normal(k1, (4, 8, 64, 128), dtype=jnp.float32)
    # Ragged size (numel % 128 != 0): exercises in-kernel row mask + jnp tail.
    x_ragged = jax.random.normal(k2, (3, 5, 7, 11), dtype=jnp.float32)
    # bf16 input: kernel reads native bf16 from HBM, casts to f32 in-register.
    x_bf16 = x_mid.astype(jnp.bfloat16)

    results = []
    for x in (x_small, x_mid, x_ragged, x_bf16):
        for is_real, is_disc in ((True, True), (False, True), (True, False)):
            got = hinge_gan_loss(x, is_real=is_real, is_disc=is_disc,
                                 loss_weight=loss_weight, min_pallas_bytes=0)
            want = ref_loss(x, is_real, is_disc)
            results.append((got, want))
    jax.block_until_ready([g for g, _ in results])
    for got, want in results:
        assert jnp.allclose(got, want, atol=1e-4, rtol=1e-4), (got, want)

    # Default dispatch: tiny inputs take the pure-jnp fast path.
    got = hinge_gan_loss(x_small, is_real=True, is_disc=True, loss_weight=loss_weight)
    assert jnp.allclose(got, ref_loss(x_small, True, True), atol=1e-5), got

    print("KERNEL_OK")
</pallas_src>

<mosaic_0001>
module attributes {stable_mosaic.version = 11 : i64} {
  func.func @_hinge_sum_kernel(%arg0: i32, %arg1: i32, %arg2: memref<16x128xf32, #tpu.memory_space<vmem>>, %arg3: memref<8x128xf32, #tpu.memory_space<vmem>>, %arg4: memref<16x128xf32, #tpu.memory_space<vmem>>) attributes {dimension_semantics = [#tpu.dimension_semantics<parallel>, #tpu.dimension_semantics<arbitrary>], iteration_bounds = array<i64: 2, 1>, scalar_prefetch = 0 : i64, scratch_operands = 1 : i64, tpu.core_type = #tpu.core_type<tc>, window_params = [{transform_indices = @transform_0, window_bounds = array<i64: 16, 128>}, {transform_indices = @transform_1, window_bounds = array<i64: 8, 128>}]} {
    %c0_i32 = arith.constant 0 : i32
    %0 = arith.cmpi eq, %arg1, %c0_i32 : i32
    %1 = arith.extui %0 : i1 to i32
    %c0_i32_0 = arith.constant 0 : i32
    %2 = arith.cmpi ne, %1, %c0_i32_0 : i32
    scf.if %2 {
      %cst_11 = arith.constant 0.000000e+00 : f32
      %24 = vector.broadcast %cst_11 : f32 to vector<16x128xf32>
      %c0_12 = arith.constant 0 : index
      %c0_13 = arith.constant 0 : index
      %25 = vector.load %arg4[%c0_12, %c0_13] : memref<16x128xf32, #tpu.memory_space<vmem>>, vector<16x128xf32>
      tpu.vector_store %arg4[%c0_12, %c0_13], %24 {strides = array<i32>} : memref<16x128xf32, #tpu.memory_space<vmem>>, vector<16x128xf32>,
    } else {
    }
    %c0 = arith.constant 0 : index
    %c0_1 = arith.constant 0 : index
    %3 = vector.load %arg2[%c0, %c0_1] : memref<16x128xf32, #tpu.memory_space<vmem>>, vector<16x128xf32>
    %cst = arith.constant 1.000000e+00 : f32
    %4 = vector.broadcast %cst : f32 to vector<16x128xf32>
    %5 = arith.subf %4, %3 : vector<16x128xf32>
    %cst_2 = arith.constant 0.000000e+00 : f32
    %6 = vector.broadcast %cst_2 : f32 to vector<16x128xf32>
    %7 = arith.maximumf %5, %6 : vector<16x128xf32>
    %c1_i32 = arith.constant 1 : i32
    %8 = arith.muli %arg0, %c1_i32 : i32
    %9 = arith.addi %8, %arg1 : i32
    %c16_i32 = arith.constant 16 : i32
    %10 = arith.muli %9, %c16_i32 : i32
    %11 = tpu.iota {dimensions = array<i32: 0>} : vector<16x128xi32>
    %12 = vector.broadcast %10 : i32 to vector<16x128xi32>
    %13 = arith.addi %12, %11 : vector<16x128xi32>
    %c16_i32_3 = arith.constant 16 : i32
    %14 = vector.broadcast %c16_i32_3 : i32 to vector<16x128xi32>
    %15 = arith.cmpi slt, %13, %14 : vector<16x128xi32>
    %cst_4 = arith.constant 0.000000e+00 : f32
    %16 = vector.broadcast %cst_4 : f32 to vector<16x128xf32>
    %17 = arith.select %15, %7, %16 : vector<16x128xi1>, vector<16x128xf32>
    %c0_5 = arith.constant 0 : index
    %c0_6 = arith.constant 0 : index
    %18 = vector.load %arg4[%c0_5, %c0_6] : memref<16x128xf32, #tpu.memory_space<vmem>>, vector<16x128xf32>
    %19 = arith.addf %18, %17 : vector<16x128xf32>
    %c0_7 = arith.constant 0 : index
    %c0_8 = arith.constant 0 : index
    %20 = vector.load %arg4[%c0_7, %c0_8] : memref<16x128xf32, #tpu.memory_space<vmem>>, vector<16x128xf32>
    tpu.vector_store %arg4[%c0_7, %c0_8], %19 {strides = array<i32>} : memref<16x128xf32, #tpu.memory_space<vmem>>, vector<16x128xf32>,
    %c0_i32_9 = arith.constant 0 : i32
    %21 = arith.cmpi eq, %arg1, %c0_i32_9 : i32
    %22 = arith.extui %21 : i1 to i32
    %c0_i32_10 = arith.constant 0 : i32
    %23 = arith.cmpi ne, %22, %c0_i32_10 : i32
    scf.if %23 {
      %c0_11 = arith.constant 0 : index
      %c0_12 = arith.constant 0 : index
      %24 = vector.load %arg4[%c0_11, %c0_12] : memref<16x128xf32, #tpu.memory_space<vmem>>, vector<16x128xf32>
      %25 = vector.shape_cast %24 : vector<16x128xf32> to vector<2x8x128xf32>
      %cst_13 = arith.constant dense<0.000000e+00> : vector<8x128xf32>
      %26 = vector.multi_reduction <add>, %25, %cst_13 [0] : vector<2x8x128xf32> to vector<8x128xf32>
      %c0_14 = arith.constant 0 : index
      %c0_15 = arith.constant 0 : index
      %27 = vector.load %arg3[%c0_14, %c0_15] : memref<8x128xf32, #tpu.memory_space<vmem>>, vector<8x128xf32>
      tpu.vector_store %arg3[%c0_14, %c0_15], %26 {strides = array<i32>} : memref<8x128xf32, #tpu.memory_space<vmem>>, vector<8x128xf32>,
    } else {
    }
    return
  }
  func.func @transform_0(%arg0: i32, %arg1: i32) -> (i32, i32) {
    %c1_i32 = arith.constant 1 : i32
    %0 = arith.muli %arg0, %c1_i32 : i32
    %1 = arith.addi %0, %arg1 : i32
    %c0_i32 = arith.constant 0 : i32
    %2 = arith.minsi %1, %c0_i32 : i32
    %c0_i32_0 = arith.constant 0 : i32
    %c0_i32_1 = arith.constant 0 : i32
    return %2, %c0_i32_0 : i32, i32
  }
  func.func @transform_1(%arg0: i32, %arg1: i32) -> (i32, i32) {
    %c0_i32 = arith.constant 0 : i32
    %c0_i32_0 = arith.constant 0 : i32
    return %arg0, %c0_i32 : i32, i32
  }
}

</mosaic_0001>

<bundles_post_ra>
// kernel: tpu_custom_call.1
= control target key start
LH: loop header
LB: loop body
LE: loop exit
PB: predicated region body
PF: predicated region fallthrough
CT: control target
= control target key end

     0   :  { %6 = vsyncpa [#allocation4], 0  ;;  %s690_s0 = inlined_call_operand.hbm [shape: f32[16,128], index: 0, kind: input, shape index: {}]   ;;  %s691_s1 = inlined_call_operand.hbm [shape: f32[16,128], index: 1, kind: output, shape index: {}]  }
   0x1   :  { %8 = vsyncpa [#allocation4 + $0x1], 0 }
   0x2   :  { %9 = vsyncpa [#allocation5], 0 }
   0x3   :  { %11 = vsyncpa [#allocation5 + $0x1], 0  ;;  %s545_s6 = smov 0   ;;  %s547_s7 = smov 0  }
   0x4   :  { %s549_s8 = smov 0   ;;  %s551_s9 = smov 0  }
   0x5   :  { %s553_s10 = smov 0   ;;  %s555_s11 = smov 0  }
   0x6   :  { %s557_s12 = smov 0   ;;  %s559_s13 = smov 0  }
   0x7 LB: > { %s293_s14 = sadd.s32 4294967295, %s530_s13   ;;  %s294_s15 = sadd.s32 4294967294, %s530_s13   ;;  %s530_s13 = sphi %s559_s13, %s17_s13   ;;  %s526_s12 = sphi %s557_s12, %s702_s12   ;;  %s522_s11 = sphi %s555_s11, %s701_s11   ;;  %s518_s10 = sphi %s553_s10, %s680_s10   ;;  %s514_s9 = sphi %s551_s9, %s700_s9   ;;  %s510_s8 = sphi %s549_s8, %s699_s8   ;;  %s506_s7 = sphi %s547_s7, %s698_s7   ;;  %s502_s6 = sphi %s545_s6, %s697_s6  }
   0x8   : > { %s29_s16 = sadd.s32 1, %s526_s12  ;;  %p499_p1 = scmp.ne.s32.totalorder %s518_s10, 0 }
   0x9   : > { %p31_p0 = scmp.ge.s32.totalorder %s29_s16, 2  ;;  %p50_p2 = scmp.eq.s32.totalorder %s530_s13, 0 }
   0xa   : > { %p55_p3 = scmp.ne.s32.totalorder %s518_s10, %s514_s9  ;;  %p56_p5 = scmp.eq.s32.totalorder %s293_s14, 0 }
   0xb   : > { %s704_s16 = smov (%p31_p0, %s29_s16), 0  ;;  %p591_p4 = por %p499_p1, %p50_p2 }
   0xc   : > { %p595_p6 = por %p56_p5, %p55_p3  ;;  %s65_s19 = ssub.s32 %s526_s12, %s704_s16 }
   0xd   : > { %p66_p7 = scmp.eq.s32.totalorder %s65_s19, 0  ;;  %s68_s20 = sadd.s32 1, %s510_s8 }
   0xe   : > { %p78_p8 = scmp.ne.s32.totalorder %s510_s8, %s506_s7  ;;  %p79_p9 = scmp.eq.s32.totalorder %s293_s14, 1 }
   0xf   : > { %s603_s21 = scalar_select %p66_p7, %s510_s8, %s68_s20  }
  0x10   : > { %p84_p10 = scmp.ne.s32.totalorder %s506_s7, %s502_s6  ;;  %p85_p11 = scmp.eq.s32.totalorder %s294_s15, 1 }
  0x11   : > { %p609_p12 = por %p79_p9, %p78_p8  ;;  %p296_p13 = scmp.ge.s32.totalorder %s530_s13, 2 }
  0x12   : > { %p614_p0 = por %p85_p11, %p84_p10  ;;  %p321_p1 = scmp.lt.s32.totalorder %s530_s13, 2 }
  0x13   : > { %s118_s26 = sshll.u32 %s690_s0, 4  ;;  %s532_s27 = smov [#allocation3]   ;;  %s119_s26 = int_to_ptr.hbm [resolvable:$true] %s118_s26 }
  0x14   : > { %s120_s28 = sshll.u32 %s532_s27, 4  ;;  %p624_p2 = pnand %p321_p1, %p591_p4  ;;  %s121_s28 = int_to_ptr.vmem [resolvable:$true] %s120_s28 }
  0x15   : > { %p300_p3 = scmp.ge.s32.totalorder %s530_s13, 1  ;;  %p128_p5 = scmp.lt.s32.totalorder %s530_s13, 3 }
  0x16   : > { %s397_s30 = sshra.s32 %s119_s26, 4  ;;  %p401_p8 = pneg %p624_p2  ;;  %s398_s30 = int_to_ptr.hbm [resolvable:$true] %s397_s30 }
  0x17   : > { %s399_s2 = scalar_lea.hbm %s398_s30, 16  ;;  %s404_s5 = scalar_lea.hbm %s690_s0, 16 }
  0x18   : > { %p400_p7 = scmp.ne.s32.totalorder %s398_s30, %s399_s2  ;;  %p406_p11 = scmp.lt.s32.totalorder %s404_s5, %s399_s2 }
  0x1a   : > { %p402_p9 = pnand %p401_p8, %p400_p7 }
  0x1c   : > { %p403_p10 = pneg %p402_p9 }
  0x1e   : > { %p408_p4 = pnand %p406_p11, %p403_p10 }
  0x20   : > { %411 = shalt.err (!%p408_p4)
}
  0x21   : > { %s533_s9 = smov 128   ;;  %s534_s14 = smov 8  }
  0x22   : > { %316 = dma.hbm_to_vmem [thread:$0]  (!%p624_p2), %s119_s26, 256, %s121_s28, [#allocation4], %s533_s9, %s533_s9, %s534_s14  }
  0x23   : > { %p129_p1 = pnand %p300_p3, %p128_p5 }
  0x24   : > { %s134_s15 = sand.u32 (!%p129_p1), 1, %s518_s10  }
  0x25   : > { %132 = sbr.rel (%p129_p1) target bundleno = 59 (0x3b), region = 24  ;;  %s301_s17 = sshll.u32 (!%p129_p1), %s134_s15, 4 }
  0x26   : > { %s135_s19 = scalar_lea.sflag (!%p129_p1), [#allocation4], %s134_s15  ;;  %s138_s20 = scalar_lea.vmem (!%p129_p1), [#allocation3], %s301_s17 }
  0x2a   : > { %492 = dma.done.wait (%p595_p6), %s135_s19, 256  }
  0x2b   : > { %494 = vsyncadd (%p595_p6), %s135_s19, 4294967040  ;;  %s303_s24 = sshll.u32 %s522_s11, 4  ;;  %v176_v0 = vlaneseq  ;;  %s155_s25 = sand.u32 1, %s506_s7   ;;  %v168_v6 = vld [vmem:[%s138_s20] sm:$0xff]  ;;  %v169_v7 = vld [vmem:[%s138_s20 + $0x8] sm:$0xff] }
  0x2c   : > { %v179_v2 = vstv %s303_s24  ;;  %s302_s26 = sshll.u32 %s155_s25, 3  ;;  %s305_s27 = sshll.u32 %s522_s11, 3  ;;  %v170_v8 = vsub.f32 1.0, %v168_v6  ;;  %v171_v9 = vsub.f32 1.0, %v169_v7 }
  0x2d   : > { %v177_v1 = vshrl.u32 %v176_v0, 7  ;;  %s210_s18 = scalar_lea.hbm %s691_s1, %s305_s27  ;;  %s157_s30 = scalar_lea.vmem [#allocation6], %s302_s26 }
  0x2e   : > { %v172_v10 = vmax.f32 %v170_v8, 0.0  ;;  %v173_v11 = vmax.f32 %v171_v9, 0.0  ;;  %s212_s2 = sshll.u32 %s157_s30, 4  ;;  %s214_s3 = sshll.u32 %s210_s18, 4  ;;  %s213_s2 = int_to_ptr.vmem [resolvable:$true] %s212_s2  ;;  %s215_s3 = int_to_ptr.hbm [resolvable:$true] %s214_s3 }
  0x2f   : > { %v178_v3 = vadd.s32 8, %v177_v1  ;;  %v180_v4 = vadd.s32 %v179_v2, %v177_v1  ;;  %s200_s11 = scalar_lea.sflag [#allocation5], %s155_s25  ;;  %s441_s4 = sshra.s32 %s215_s3, 4  ;;  %s442_s4 = int_to_ptr.hbm [resolvable:$true] %s441_s4 }
  0x30   : > { %s443_s5 = scalar_lea.hbm %s442_s4, 8  ;;  %s447_s15 = scalar_lea.hbm %s691_s1, 16 }
  0x31   : > { %v181_v5 = vadd.s32 %v179_v2, %v178_v3  ;;  %vm182_vm0 = vcmp.lt.s32.totalorder %v180_v4, 16  ;;  %p444_p6 = scmp.ne.s32.totalorder %s442_s4, %s443_s5  ;;  %p448_p5 = scmp.lt.s32.totalorder %s442_s4, %s691_s1 }
  0x32   : > { %v184_v12 = vsel %vm182_vm0, %v172_v10, 0.0  ;;  %p449_p7 = scmp.lt.s32.totalorder %s447_s15, %s443_s5 }
  0x33   : > { %vm183_vm1 = vcmp.lt.s32.totalorder %v181_v5, 16  ;;  %p445_p2 = pnand %p444_p6, %p609_p12 }
  0x34   : > { %v185_v13 = vsel %vm183_vm1, %v173_v11, 0.0  ;;  %p450_p8 = por %p449_p7, %p448_p5 }
  0x35   : > { %v197_v14 = vadd.f32 %v185_v13, %v184_v12  ;;  %p446_p3 = pneg %p445_p2 }
  0x37   : > { %198 = vst [vmem:[%s157_s30] sm:$0xff] %v197_v14  ;;  %p451_p9 = pnand %p450_p8, %p446_p3 }
  0x39   : > { %454 = shalt.err (!%p451_p9)
}
  0x3a   : > { %311 = dma.vmem_to_hbm [thread:$0]  (%p609_p12), %s213_s2, 128, %s215_s3, %s200_s11  }
  0x3b PF: > { %s226_s20 = sand.u32 1, %s502_s6   ;;  %p318_p10 = pnand %p296_p13, %p614_p0 }
  0x3c   : > { %s227_s24 = scalar_lea.sflag [#allocation5], %s226_s20 }
  0x3d   : > { %p319_p11 = pneg %p318_p10 }
  0x3f   : > { %496 = dma.done.wait (%p319_p11), %s227_s24, 128  }
  0x40   : > { %498 = vsyncadd (%p319_p11), %s227_s24, 4294967168  ;;  %s17_s13 = sadd.s32 1, %s530_s13   ;;  %s697_s6 = smov %s506_s7 }
  0x41   : > { %p14_p4 = scmp.ge.s32.totalorder %s17_s13, 4   ;;  %s698_s7 = smov %s510_s8 }
  0x42   : > { %s699_s8 = smov %s603_s21  ;;  %s700_s9 = smov %s518_s10 }
  0x43   : > { %s680_s10 = smov 0   ;;  %s701_s11 = smov %s526_s12 }
  0x44   : > { %s702_s12 = smov %s704_s16  ;;  %16 = sbr.rel (!%p14_p4) target bundleno = 7 (0x7), region = 77 }
  0x49   :  { %233 = vsyncpa [#allocation4], 1 }
  0x4a   :  { %235 = vsyncpa [#allocation4 + $0x1], 1 }
  0x4b   :  { %236 = vsyncpa [#allocation5], 1 }
  0x4c   :  { %238 = vsyncpa [#allocation5 + $0x1], 1 }

</bundles_post_ra>
